<compile_context>
chip_gen: v5e
topology: v5e:2x2
jax: 0.10.0
libtpu: 0.0.40
codegen_flags: <defaults>
</compile_context>

<pallas_src>
import functools

import jax
import jax.numpy as jnp
from jax.experimental import pallas as pl
from jax.experimental.pallas import tpu as pltpu


def _depth_norm_kernel(z_ref, o_ref, *, scale):
    # Pure elementwise hot path on the VPU: multiply by the static scale.
    o_ref[...] = z_ref[...] * scale


def depth_normalizer_fine(z, z_size, *, lanes=512, max_row_tile=1024):
    """Pallas equivalent of DepthNormalizer_fine.forward.

    z: [B, 1, N] float array (depth values in image coordinates)
    z_size: python scalar (opt.z_size, static config)
    returns: [B, 1, N] array, z * (1024 // 2) / z_size
    """
    B, C, N = z.shape
    scale = float(1024 // 2) / float(z_size)

    total = B * C * N

    # Sublane packing depends on element width: 32-bit -> 8, 16-bit -> 16, 8-bit -> 32.
    sublane = 32 // jnp.dtype(z.dtype).itemsize

    # Lane-dense (rows, lanes) view of the flat data; pad only the last
    # partial lane row (at most lanes-1 elements).
    rows = pl.cdiv(total, lanes)
    padded_total = rows * lanes

    flat = z.reshape(total)
    if padded_total != total:
        flat = jnp.pad(flat, (0, padded_total - total))
    z2d = flat.reshape(rows, lanes)

    # Row tile: multiple of the sublane count, capped at max_row_tile.
    row_tile = min(max_row_tile, pl.cdiv(rows, sublane) * sublane)

    grid = (pl.cdiv(rows, row_tile),)  # partial last block is fine

    out2d = pl.pallas_call(
        functools.partial(_depth_norm_kernel, scale=scale),
        out_shape=jax.ShapeDtypeStruct((rows, lanes), z.dtype),
        grid=grid,
        in_specs=[pl.BlockSpec((row_tile, lanes), lambda i: (i, 0))],
        out_specs=pl.BlockSpec((row_tile, lanes), lambda i: (i, 0)),
        compiler_params=pltpu.CompilerParams(
            dimension_semantics=("parallel",)
        ),
    )(z2d)

    out_flat = out2d.reshape(padded_total)
    if padded_total != total:
        out_flat = out_flat[:total]
    return out_flat.reshape(B, C, N)


if __name__ == "__main__":
    key = jax.random.PRNGKey(0)

    B, C, N = 2, 1, 256        # [B, 1, N] depth values
    z_size = 200.0             # opt.z_size (synthetic, deterministic)

    z = jax.random.normal(key, (B, C, N), dtype=jnp.float32)

    out = depth_normalizer_fine(z, z_size)
    out = jax.block_until_ready(out)

    # Reference check in plain JAX (same semantics as the PyTorch module).
    ref = z * (1024 // 2) / z_size
    assert out.shape == (B, C, N)
    assert jnp.allclose(out, ref, rtol=1e-6, atol=1e-6)

    print("KERNEL_OK")
</pallas_src>

<mosaic_0001>
module attributes {stable_mosaic.version = 11 : i64} {
  func.func @_depth_norm_kernel(%arg0: i32, %arg1: memref<8x512xf32, #tpu.memory_space<vmem>>, %arg2: memref<8x512xf32, #tpu.memory_space<vmem>>) attributes {dimension_semantics = [#tpu.dimension_semantics<parallel>], iteration_bounds = array<i64: 1>, scalar_prefetch = 0 : i64, scratch_operands = 0 : i64, tpu.core_type = #tpu.core_type<tc>, window_params = [{transform_indices = @transform_0, window_bounds = array<i64: 8, 512>}, {transform_indices = @transform_1, window_bounds = array<i64: 8, 512>}]} {
    %c0 = arith.constant 0 : index
    %c0_0 = arith.constant 0 : index
    %0 = vector.load %arg1[%c0, %c0_0] : memref<8x512xf32, #tpu.memory_space<vmem>>, vector<8x512xf32>
    %cst = arith.constant 2.560000e+00 : f32
    %1 = vector.broadcast %cst : f32 to vector<8x512xf32>
    %2 = arith.mulf %0, %1 : vector<8x512xf32>
    %c0_1 = arith.constant 0 : index
    %c0_2 = arith.constant 0 : index
    %3 = vector.load %arg2[%c0_1, %c0_2] : memref<8x512xf32, #tpu.memory_space<vmem>>, vector<8x512xf32>
    tpu.vector_store %arg2[%c0_1, %c0_2], %2 {strides = array<i32>} : memref<8x512xf32, #tpu.memory_space<vmem>>, vector<8x512xf32>,
    return
  }
  func.func @transform_0(%arg0: i32) -> (i32, i32) {
    %c0_i32 = arith.constant 0 : i32
    %c0_i32_0 = arith.constant 0 : i32
    return %arg0, %c0_i32 : i32, i32
  }
  func.func @transform_1(%arg0: i32) -> (i32, i32) {
    %c0_i32 = arith.constant 0 : i32
    %c0_i32_0 = arith.constant 0 : i32
    return %arg0, %c0_i32 : i32, i32
  }
}

</mosaic_0001>

<bundles_post_ra>
// kernel: tpu_custom_call.1
= control target key start
LH: loop header
LB: loop body
LE: loop exit
PB: predicated region body
PF: predicated region fallthrough
CT: control target
= control target key end

     0   :  { %6 = vsyncpa [#allocation3], 0  ;;  %s174_s0 = inlined_call_operand.hbm [shape: f32[1,512], index: 0, kind: input, shape index: {}]   ;;  %s175_s1 = inlined_call_operand.hbm [shape: f32[1,512], index: 1, kind: output, shape index: {}]  }
   0x1   :  { %7 = vsyncpa [#allocation4], 0 }
   0x2   :  { %11 = vsyncadd [#allocation3], 448  ;;  %s12_s8 = sshll.u32 %s174_s0, 4  ;;  %s128_s9 = smov [#allocation2]   ;;  %s13_s8 = int_to_ptr.hbm [resolvable:$true] %s12_s8 }
   0x3   :  { %s14_s10 = sshll.u32 %s128_s9, 4  ;;  %s129_s11 = smov 64   ;;  %s15_s10 = int_to_ptr.vmem [resolvable:$true] %s14_s10 }
   0x4   :  { %s130_s12 = smov 4  }
   0x5   :  { %20 = dma.hbm_to_vmem [thread:$0]  %s13_s8, 64, %s15_s10, [#allocation3], %s129_s11, %s129_s11, %s130_s12  }
   0x6   :  { %124 = dma.done.wait [#allocation3], 512  }
   0x7   :  { %125 = vsyncadd [#allocation3], 4294966784  ;;  %v41_v0 = vlaneseq  ;;  %v25_v2 = vld [vmem:[#allocation2] sm:$0xf]  ;;  %v26_v3 = vld [vmem:[#allocation2 + $0x4] sm:$0xf] }
   0x8   :  { %v27_v4 = vld [vmem:[#allocation2 + $0x8] sm:$0xf]  ;;  %v33_v5 = vmul.f32 2.56, %v25_v2  ;;  %v34_v6 = vmul.f32 2.56, %v26_v3 }
   0x9   :  { %vm148_vm0 = vcmp.lt.s32.totalorder %v41_v0, 512  ;;  %v35_v7 = vmul.f32 2.56, %v27_v4  ;;  %v28_v8 = vld [vmem:[#allocation2 + $0xc] sm:$0xf] }
   0xa   :  { %v29_v9 = vld [vmem:[#allocation2 + $0x10] sm:$0xf]  ;;  %v30_v10 = vld [vmem:[#allocation2 + $0x14] sm:$0xf]  ;;  %45 = vst.msk [vmem:[#allocation5] sm:$0xf] %vm148_vm0, %v33_v5 }
   0xb   :  { %v36_v11 = vmul.f32 2.56, %v28_v8  ;;  %v37_v12 = vmul.f32 2.56, %v29_v9  ;;  %46 = vst.msk [vmem:[#allocation5 + $0x4] sm:$0xf] %vm148_vm0, %v34_v6 }
   0xc   :  { %v38_v13 = vmul.f32 2.56, %v30_v10  ;;  %v31_v14 = vld [vmem:[#allocation2 + $0x18] sm:$0xf]  ;;  %47 = vst.msk [vmem:[#allocation5 + $0x8] sm:$0xf] %vm148_vm0, %v35_v7 }
   0xd   :  { %v39_v15 = vmul.f32 2.56, %v31_v14  ;;  %v32_v16 = vld [vmem:[#allocation2 + $0x1c] sm:$0xf]  ;;  %48 = vst.msk [vmem:[#allocation5 + $0xc] sm:$0xf] %vm148_vm0, %v36_v11 }
   0xe   :  { %v40_v17 = vmul.f32 2.56, %v32_v16  ;;  %49 = vst.msk [vmem:[#allocation5 + $0x10] sm:$0xf] %vm148_vm0, %v37_v12 }
   0xf   :  { %50 = vst.msk [vmem:[#allocation5 + $0x14] sm:$0xf] %vm148_vm0, %v38_v13 }
  0x10   :  { %51 = vst.msk [vmem:[#allocation5 + $0x18] sm:$0xf] %vm148_vm0, %v39_v15 }
  0x11   :  { %52 = vst.msk [vmem:[#allocation5 + $0x1c] sm:$0xf] %vm148_vm0, %v40_v17 }
  0x12   :  { %56 = vsyncadd [#allocation4], 448  ;;  %s59_s14 = sshll.u32 %s175_s1, 4  ;;  %s131_s15 = smov [#allocation5]   ;;  %s60_s14 = int_to_ptr.hbm [resolvable:$true] %s59_s14 }
  0x13   :  { %s57_s16 = sshll.u32 %s131_s15, 4  ;;  %s58_s16 = int_to_ptr.vmem [resolvable:$true] %s57_s16 }
  0x14   :  { %65 = dma.vmem_to_hbm [thread:$0]  %s58_s16, 64, %s60_s14, [#allocation4], %s129_s11, %s129_s11, %s130_s12  }
  0x15   :  { %126 = dma.done.wait [#allocation4], 512  }
  0x16   :  { %127 = vsyncadd [#allocation4], 4294966784 }
  0x17   :  { %70 = vsyncpa [#allocation3], 1 }
  0x18   :  { %71 = vsyncpa [#allocation4], 1 }

</bundles_post_ra>
